<compile_context>
chip_gen: v7x
topology: tpu7x:2x2x1
jax: 0.10.0
libtpu: 0.0.40
codegen_flags: <defaults>
</compile_context>

<pallas_src>
import functools

import jax
import jax.numpy as jnp
from jax.experimental import pallas as pl
from jax.experimental.pallas import tpu as pltpu

EPSILON_FP16 = 1e-05
LANES = 128


def _partial_reduce(x, tm, C):
    # Collapse a (tm, C) tile to an (8, C) partial sum (VPU adds over the
    # leading axis only; no cross-lane work).  For tiny single-block cases
    # (tm not a multiple of 8, or tm <= 8) accumulate the tile directly.
    if tm % 8 == 0 and tm > 8:
        return jnp.sum(x.reshape(tm // 8, 8, C), axis=0)
    return x


def _focal_loss_kernel(pred_ref, true_ref, sec_ref,
                       bce_out, f_out, fs_out,
                       *scratch,
                       gamma, secondary_factor, binary_labels,
                       tm, C, valid_rows, first_masked_block, any_mask):
    c = pl.program_id(0)           # shard (TensorCore) axis, "parallel"
    ii = pl.program_id(1)          # reduction axis, "arbitrary"
    inner = pl.num_programs(1)
    blk = c * inner + ii           # logical block id (may be >= n_blocks on
                                   # the clamped duplicate tail step)

    if gamma == 0.0:
        acc_bce, acc_fs = scratch
        acc_f = None
    else:
        acc_bce, acc_f, acc_fs = scratch

    @pl.when(ii == 0)
    def _():
        acc_bce[...] = jnp.zeros_like(acc_bce)
        if acc_f is not None:
            acc_f[...] = jnp.zeros_like(acc_f)
        acc_fs[...] = jnp.zeros_like(acc_fs)

    p = pred_ref[...].astype(jnp.float32)
    p = jnp.clip(p, EPSILON_FP16, 1.0 - EPSILON_FP16)
    y = true_ref[...].astype(jnp.float32)
    sec = sec_ref[...].astype(jnp.float32)

    if binary_labels:
        # One log per element instead of two (EUP becomes the binding unit
        # once inputs are narrow and DMA stops dominating).
        bce = -jnp.log(jnp.where(y > 0.5, p, 1.0 - p))
    else:
        # BCELoss(reduction='none'): -(y*log(p) + (1-y)*log(1-p))
        bce = -(y * jnp.log(p) + (1.0 - y) * jnp.log(1.0 - p))

    # Focal weighting, specialized on gamma at trace time.  alpha is folded
    # into the finalize scalars in the wrapper, not applied per element.
    if gamma == 0.0:
        f_elem = None            # F_loss == alpha * bce  (derived at finalize)
        base = bce
    else:
        one_minus_pt = 1.0 - jnp.exp(-bce)
        if gamma == 1.0:
            w = one_minus_pt
        elif gamma == 2.0:
            w = one_minus_pt * one_minus_pt
        else:
            w = jnp.power(one_minus_pt, jnp.float32(gamma))
        f_elem = w * bce
        base = f_elem

    sec_w = jnp.where(sec > 0.0, jnp.float32(secondary_factor), jnp.float32(1.0))
    fs_elem = sec_w * base

    def accumulate(b, f, fs):
        acc_bce[...] = acc_bce[...] + _partial_reduce(b, tm, C)
        if acc_f is not None:
            acc_f[...] = acc_f[...] + _partial_reduce(f, tm, C)
        acc_fs[...] = acc_fs[...] + _partial_reduce(fs, tm, C)

    if any_mask:
        # Hot path: all blocks before the ragged / duplicated tail blocks
        # accumulate with zero masking overhead.
        @pl.when(blk < first_masked_block)
        def _():
            accumulate(bce, f_elem, fs_elem)

        # Tail block(s): row-level mask (also fully masks the clamped
        # duplicate block of shard 1, since blk*tm >= valid_rows there).
        @pl.when(blk >= first_masked_block)
        def _():
            rid = blk * tm + jax.lax.broadcasted_iota(jnp.int32, (tm, C), 0)
            m = rid < valid_rows
            zero = jnp.float32(0.0)
            accumulate(jnp.where(m, bce, zero),
                       None if f_elem is None else jnp.where(m, f_elem, zero),
                       jnp.where(m, fs_elem, zero))
    else:
        accumulate(bce, f_elem, fs_elem)

    # Finalize: one cross-lane reduction per output, per shard (raw sums;
    # the wrapper combines shards and applies alpha / 1/N).
    @pl.when(ii == inner - 1)
    def _():
        s_bce = jnp.sum(acc_bce[...])
        bce_out[0, 0] = s_bce
        f_out[0, 0] = s_bce if acc_f is None else jnp.sum(acc_f[...])
        fs_out[0, 0] = jnp.sum(acc_fs[...])


def sed_removed_focal_loss(y_pred, all_labels, secondary_labels,
                           gamma=0.0, alpha=1.0, secondary_factor=0.1,
                           row_tile=4096, binary_labels=False):
    """Forward pass of SedRemovedFocalLoss. Call under jax.jit so the
    reshape views below are free (no HBM copy, no padding is ever done)."""
    bs, s, o = all_labels.shape
    assert y_pred.shape == (bs, s, o)
    total = bs * s * o

    # 2-D streaming layout without any padding copy.
    if total % LANES == 0:
        R, C = total // LANES, LANES          # lane-dense view
    else:
        R, C = bs * s, o                      # keep the full last dim

    p2 = jnp.reshape(y_pred, (R, C))
    y2 = jnp.reshape(all_labels, (R, C))
    s2 = jnp.reshape(secondary_labels, (R, C))

    # --- tile-size selection + VMEM budget ---------------------------------
    cpad = ((C + LANES - 1) // LANES) * LANES
    in_itemsize = sum(jnp.dtype(a.dtype).itemsize for a in (p2, y2, s2))
    # per-row VMEM: double-buffered inputs + ~8 live f32 elementwise temps.
    per_row = 2 * cpad * in_itemsize + 8 * cpad * 4
    budget = 40 << 20                          # fits v5e/v6e/v7x VMEM
    tm_cap = max(8, (budget // per_row) // 8 * 8)
    tm = max(8, (min(int(row_tile), int(tm_cap)) // 8) * 8)
    if R <= tm:
        tm = R                                 # single full block
    n_blocks = -(-R // tm)

    # --- shard blocks across 2 TensorCores (v7x megacore) -------------------
    # Per-shard partial sums are written to distinct SMEM slots and reduced
    # in the wrapper (no cross-core races).  On 1-TC chips the leading
    # "parallel" axis just iterates sequentially and stays correct.
    num_shards = 2 if n_blocks >= 4 else 1
    inner = -(-n_blocks // num_shards)

    ragged_last = (R % tm) != 0
    first_masked_block = (n_blocks - 1) if ragged_last else n_blocks
    any_mask = first_masked_block < num_shards * inner

    kernel = functools.partial(
        _focal_loss_kernel,
        gamma=float(gamma),
        secondary_factor=float(secondary_factor),
        binary_labels=bool(binary_labels),
        tm=int(tm), C=int(C), valid_rows=int(R),
        first_masked_block=int(first_masked_block),
        any_mask=bool(any_mask),
    )

    acc_rows = 8 if (tm % 8 == 0 and tm > 8) else tm
    n_acc = 2 if float(gamma) == 0.0 else 3
    scratch = [pltpu.VMEM((acc_rows, C), jnp.float32)] * n_acc

    n_blk_last = n_blocks - 1

    def in_map(c, i):
        # Clamp so the duplicate tail step of shard 1 (odd block count) still
        # DMAs a valid block; its contribution is fully masked in the kernel.
        return (jnp.minimum(c * inner + i, n_blk_last), 0)

    row_spec = pl.BlockSpec((tm, C), in_map)
    out_spec = pl.BlockSpec((1, 1), lambda c, i: (c, 0),
                            memory_space=pltpu.SMEM)
    out_shape = jax.ShapeDtypeStruct((num_shards, 1), jnp.float32)

    vmem_limit = int(min(48 << 20, max(24 << 20, per_row * tm + (8 << 20))))

    bce_sum, f_sum, fs_sum = pl.pallas_call(
        kernel,
        out_shape=(out_shape, out_shape, out_shape),
        grid_spec=pltpu.PrefetchScalarGridSpec(
            num_scalar_prefetch=0,
            grid=(num_shards, inner),
            in_specs=[row_spec, row_spec, row_spec],
            out_specs=(out_spec, out_spec, out_spec),
            scratch_shapes=scratch,
        ),
        compiler_params=pltpu.CompilerParams(
            dimension_semantics=("parallel", "arbitrary"),
            vmem_limit_bytes=vmem_limit),
    )(p2, y2, s2)

    inv = jnp.float32(1.0 / float(total))
    a = jnp.float32(alpha)
    bce_mean = jnp.sum(bce_sum) * inv
    f_mean = a * jnp.sum(f_sum) * inv
    fs_mean = a * jnp.sum(fs_sum) * inv
    return fs_mean, {"bce_loss": bce_mean, "F_loss": f_mean,
                     "FScaled_loss": fs_mean}


def _reference(y_pred, all_labels, secondary_labels,
               gamma=0.0, alpha=1.0, secondary_factor=0.1):
    p = jnp.clip(y_pred.astype(jnp.float32), EPSILON_FP16, 1.0 - EPSILON_FP16)
    y = all_labels.astype(jnp.float32)
    ysec = secondary_labels.astype(jnp.float32)
    mask = jnp.where(ysec > 0.0, secondary_factor, 1.0)
    bce = -(y * jnp.log(p) + (1.0 - y) * jnp.log(1.0 - p))
    pt = jnp.exp(-bce)
    f_loss = alpha * (1.0 - pt) ** gamma * bce
    fscaled = (mask * f_loss).mean()
    return fscaled, {"bce_loss": bce.mean(), "F_loss": f_loss.mean(),
                     "FScaled_loss": fscaled}


if __name__ == "__main__":
    key = jax.random.PRNGKey(0)

    # --- Test 1: gamma=0 common path, f32 inputs, lane-dense layout --------
    bs, s, o = 2, 8, 32
    k1, k2, k3 = jax.random.split(key, 3)
    y_pred = jax.random.uniform(k1, (bs, s, o), dtype=jnp.float32)
    all_labels = (jax.random.uniform(k2, (bs, s, o)) > 0.8).astype(jnp.float32)
    sec_labels = (jax.random.uniform(k3, (bs, s, o)) > 0.9).astype(jnp.float32)

    fn1 = jax.jit(functools.partial(sed_removed_focal_loss,
                                    gamma=0.0, alpha=1.0, secondary_factor=0.1))
    fscaled, losses = fn1(y_pred, all_labels, sec_labels)
    jax.block_until_ready(fscaled)
    rf, rl = _reference(y_pred, all_labels, sec_labels, gamma=0.0, alpha=1.0)
    assert jnp.allclose(fscaled, rf, rtol=1e-5, atol=1e-6)
    assert jnp.allclose(losses["bce_loss"], rl["bce_loss"], rtol=1e-5, atol=1e-6)
    assert jnp.allclose(losses["F_loss"], rl["F_loss"], rtol=1e-5, atol=1e-6)

    # --- Test 2: non-multiple-of-128 total, gamma=2, bf16 labels -----------
    bs2, s2, o2 = 3, 7, 30
    kp, ka, ks = jax.random.split(jax.random.PRNGKey(1), 3)
    yp2 = jax.random.uniform(kp, (bs2, s2, o2), dtype=jnp.float32)
    al2 = (jax.random.uniform(ka, (bs2, s2, o2)) > 0.8).astype(jnp.bfloat16)
    sl2 = (jax.random.uniform(ks, (bs2, s2, o2)) > 0.9).astype(jnp.bfloat16)
    fn2 = jax.jit(functools.partial(sed_removed_focal_loss,
                                    gamma=2.0, alpha=0.5, secondary_factor=0.1))
    f2, l2 = fn2(yp2, al2, sl2)
    jax.block_until_ready(f2)
    rf2, rl2 = _reference(yp2, al2, sl2, gamma=2.0, alpha=0.5,
                          secondary_factor=0.1)
    assert jnp.allclose(f2, rf2, rtol=1e-5, atol=1e-6)
    assert jnp.allclose(l2["bce_loss"], rl2["bce_loss"], rtol=1e-5, atol=1e-6)
    assert jnp.allclose(l2["F_loss"], rl2["F_loss"], rtol=1e-5, atol=1e-6)

    # --- Test 3: multi-block + 2-shard grid + ragged tail + duplicate tail,
    #             int8 labels, single-log BCE, gamma=1 ----------------------
    bs3, s3, o3 = 4, 100, 128
    kq, kb, kc = jax.random.split(jax.random.PRNGKey(2), 3)
    yp3 = jax.random.uniform(kq, (bs3, s3, o3), dtype=jnp.float32)
    al3 = (jax.random.uniform(kb, (bs3, s3, o3)) > 0.7).astype(jnp.int8)
    sl3 = (jax.random.uniform(kc, (bs3, s3, o3)) > 0.9).astype(jnp.int8)
    fn3 = jax.jit(functools.partial(sed_removed_focal_loss,
                                    gamma=1.0, alpha=0.25, secondary_factor=0.1,
                                    row_tile=64, binary_labels=True))
    f3, l3 = fn3(yp3, al3, sl3)
    jax.block_until_ready(f3)
    rf3, rl3 = _reference(yp3, al3, sl3, gamma=1.0, alpha=0.25,
                          secondary_factor=0.1)
    assert jnp.allclose(f3, rf3, rtol=1e-4, atol=1e-6)
    assert jnp.allclose(l3["bce_loss"], rl3["bce_loss"], rtol=1e-4, atol=1e-6)
    assert jnp.allclose(l3["F_loss"], rl3["F_loss"], rtol=1e-4, atol=1e-6)

    print("KERNEL_OK")
</pallas_src>

<mosaic_0001>
module attributes {stable_mosaic.version = 11 : i64} {
  func.func @_focal_loss_kernel(%arg0: i32, %arg1: i32, %arg2: memref<4x128xf32, #tpu.memory_space<vmem>>, %arg3: memref<4x128xf32, #tpu.memory_space<vmem>>, %arg4: memref<4x128xf32, #tpu.memory_space<vmem>>, %arg5: memref<1x1xf32, #tpu.memory_space<smem>>, %arg6: memref<1x1xf32, #tpu.memory_space<smem>>, %arg7: memref<1x1xf32, #tpu.memory_space<smem>>, %arg8: memref<4x128xf32, #tpu.memory_space<vmem>>, %arg9: memref<4x128xf32, #tpu.memory_space<vmem>>) attributes {dimension_semantics = [#tpu.dimension_semantics<parallel>, #tpu.dimension_semantics<arbitrary>], iteration_bounds = array<i64: 1, 1>, scalar_prefetch = 0 : i64, scratch_operands = 2 : i64, tpu.core_type = #tpu.core_type<tc>, window_params = [{transform_indices = @transform_0, window_bounds = array<i64: 4, 128>}, {transform_indices = @transform_1, window_bounds = array<i64: 4, 128>}, {transform_indices = @transform_2, window_bounds = array<i64: 4, 128>}, {transform_indices = @transform_3, window_bounds = array<i64: 1, 1>}, {transform_indices = @transform_4, window_bounds = array<i64: 1, 1>}, {transform_indices = @transform_5, window_bounds = array<i64: 1, 1>}]} {
    %c0_i32 = arith.constant 0 : i32
    %0 = arith.cmpi eq, %arg1, %c0_i32 : i32
    %1 = arith.extui %0 : i1 to i32
    %c0_i32_0 = arith.constant 0 : i32
    %2 = arith.cmpi ne, %1, %c0_i32_0 : i32
    scf.if %2 {
      %cst_23 = arith.constant 0.000000e+00 : f32
      %36 = vector.broadcast %cst_23 : f32 to vector<4x128xf32>
      %c0_24 = arith.constant 0 : index
      %c0_25 = arith.constant 0 : index
      %37 = vector.load %arg8[%c0_24, %c0_25] : memref<4x128xf32, #tpu.memory_space<vmem>>, vector<4x128xf32>
      tpu.vector_store %arg8[%c0_24, %c0_25], %36 {strides = array<i32>} : memref<4x128xf32, #tpu.memory_space<vmem>>, vector<4x128xf32>,
      %cst_26 = arith.constant 0.000000e+00 : f32
      %38 = vector.broadcast %cst_26 : f32 to vector<4x128xf32>
      %c0_27 = arith.constant 0 : index
      %c0_28 = arith.constant 0 : index
      %39 = vector.load %arg9[%c0_27, %c0_28] : memref<4x128xf32, #tpu.memory_space<vmem>>, vector<4x128xf32>
      tpu.vector_store %arg9[%c0_27, %c0_28], %38 {strides = array<i32>} : memref<4x128xf32, #tpu.memory_space<vmem>>, vector<4x128xf32>,
    } else {
    }
    %c0 = arith.constant 0 : index
    %c0_1 = arith.constant 0 : index
    %3 = vector.load %arg2[%c0, %c0_1] : memref<4x128xf32, #tpu.memory_space<vmem>>, vector<4x128xf32>
    %cst = arith.constant 9.99999974E-6 : f32
    %cst_2 = arith.constant 0.999989986 : f32
    %4 = vector.broadcast %cst : f32 to vector<4x128xf32>
    %5 = arith.maximumf %4, %3 : vector<4x128xf32>
    %6 = vector.broadcast %cst_2 : f32 to vector<4x128xf32>
    %7 = arith.minimumf %6, %5 : vector<4x128xf32>
    %c0_3 = arith.constant 0 : index
    %c0_4 = arith.constant 0 : index
    %8 = vector.load %arg3[%c0_3, %c0_4] : memref<4x128xf32, #tpu.memory_space<vmem>>, vector<4x128xf32>
    %c0_5 = arith.constant 0 : index
    %c0_6 = arith.constant 0 : index
    %9 = vector.load %arg4[%c0_5, %c0_6] : memref<4x128xf32, #tpu.memory_space<vmem>>, vector<4x128xf32>
    %10 = math.log %7 : vector<4x128xf32>
    %11 = arith.mulf %8, %10 : vector<4x128xf32>
    %cst_7 = arith.constant 1.000000e+00 : f32
    %12 = vector.broadcast %cst_7 : f32 to vector<4x128xf32>
    %13 = arith.subf %12, %8 : vector<4x128xf32>
    %cst_8 = arith.constant 1.000000e+00 : f32
    %14 = vector.broadcast %cst_8 : f32 to vector<4x128xf32>
    %15 = arith.subf %14, %7 : vector<4x128xf32>
    %16 = math.log %15 : vector<4x128xf32>
    %17 = arith.mulf %13, %16 : vector<4x128xf32>
    %18 = arith.addf %11, %17 : vector<4x128xf32>
    %cst_9 = arith.constant 0.000000e+00 : f32
    %19 = vector.broadcast %cst_9 : f32 to vector<4x128xf32>
    %20 = arith.subf %19, %18 : vector<4x128xf32>
    %cst_10 = arith.constant 0.000000e+00 : f32
    %21 = vector.broadcast %cst_10 : f32 to vector<4x128xf32>
    %22 = arith.cmpf ogt, %9, %21 : vector<4x128xf32>
    %cst_11 = arith.constant 1.000000e-01 : f32
    %cst_12 = arith.constant 1.000000e+00 : f32
    %23 = vector.broadcast %cst_11 : f32 to vector<4x128xf32>
    %24 = vector.broadcast %cst_12 : f32 to vector<4x128xf32>
    %25 = arith.select %22, %23, %24 : vector<4x128xi1>, vector<4x128xf32>
    %26 = arith.mulf %25, %20 : vector<4x128xf32>
    %c0_13 = arith.constant 0 : index
    %c0_14 = arith.constant 0 : index
    %27 = vector.load %arg8[%c0_13, %c0_14] : memref<4x128xf32, #tpu.memory_space<vmem>>, vector<4x128xf32>
    %28 = arith.addf %27, %20 : vector<4x128xf32>
    %c0_15 = arith.constant 0 : index
    %c0_16 = arith.constant 0 : index
    %29 = vector.load %arg8[%c0_15, %c0_16] : memref<4x128xf32, #tpu.memory_space<vmem>>, vector<4x128xf32>
    tpu.vector_store %arg8[%c0_15, %c0_16], %28 {strides = array<i32>} : memref<4x128xf32, #tpu.memory_space<vmem>>, vector<4x128xf32>,
    %c0_17 = arith.constant 0 : index
    %c0_18 = arith.constant 0 : index
    %30 = vector.load %arg9[%c0_17, %c0_18] : memref<4x128xf32, #tpu.memory_space<vmem>>, vector<4x128xf32>
    %31 = arith.addf %30, %26 : vector<4x128xf32>
    %c0_19 = arith.constant 0 : index
    %c0_20 = arith.constant 0 : index
    %32 = vector.load %arg9[%c0_19, %c0_20] : memref<4x128xf32, #tpu.memory_space<vmem>>, vector<4x128xf32>
    tpu.vector_store %arg9[%c0_19, %c0_20], %31 {strides = array<i32>} : memref<4x128xf32, #tpu.memory_space<vmem>>, vector<4x128xf32>,
    %c0_i32_21 = arith.constant 0 : i32
    %33 = arith.cmpi eq, %arg1, %c0_i32_21 : i32
    %34 = arith.extui %33 : i1 to i32
    %c0_i32_22 = arith.constant 0 : i32
    %35 = arith.cmpi ne, %34, %c0_i32_22 : i32
    scf.if %35 {
      %c0_23 = arith.constant 0 : index
      %c0_24 = arith.constant 0 : index
      %36 = vector.load %arg8[%c0_23, %c0_24] : memref<4x128xf32, #tpu.memory_space<vmem>>, vector<4x128xf32>
      %37 = vector.shape_cast %36 : vector<4x128xf32> to vector<1x4x128xf32>
      %cst_25 = arith.constant dense<0.000000e+00> : vector<1xf32>
      %38 = vector.multi_reduction <add>, %37, %cst_25 [1, 2] : vector<1x4x128xf32> to vector<1xf32>
      %39 = vector.shape_cast %38 : vector<1xf32> to vector<1x1x1xf32>
      %40 = vector.extract %39[0, 0, 0] : f32 from vector<1x1x1xf32>
      %c0_26 = arith.constant 0 : index
      %c0_27 = arith.constant 0 : index
      %41 = memref.load %arg5[%c0_26, %c0_27] : memref<1x1xf32, #tpu.memory_space<smem>>
      memref.store %40, %arg5[%c0_26, %c0_27] : memref<1x1xf32, #tpu.memory_space<smem>>
      %c0_28 = arith.constant 0 : index
      %c0_29 = arith.constant 0 : index
      %42 = memref.load %arg6[%c0_28, %c0_29] : memref<1x1xf32, #tpu.memory_space<smem>>
      memref.store %40, %arg6[%c0_28, %c0_29] : memref<1x1xf32, #tpu.memory_space<smem>>
      %c0_30 = arith.constant 0 : index
      %c0_31 = arith.constant 0 : index
      %43 = vector.load %arg9[%c0_30, %c0_31] : memref<4x128xf32, #tpu.memory_space<vmem>>, vector<4x128xf32>
      %44 = vector.shape_cast %43 : vector<4x128xf32> to vector<1x4x128xf32>
      %cst_32 = arith.constant dense<0.000000e+00> : vector<1xf32>
      %45 = vector.multi_reduction <add>, %44, %cst_32 [1, 2] : vector<1x4x128xf32> to vector<1xf32>
      %46 = vector.shape_cast %45 : vector<1xf32> to vector<1x1x1xf32>
      %47 = vector.extract %46[0, 0, 0] : f32 from vector<1x1x1xf32>
      %c0_33 = arith.constant 0 : index
      %c0_34 = arith.constant 0 : index
      %48 = memref.load %arg7[%c0_33, %c0_34] : memref<1x1xf32, #tpu.memory_space<smem>>
      memref.store %47, %arg7[%c0_33, %c0_34] : memref<1x1xf32, #tpu.memory_space<smem>>
    } else {
    }
    return
  }
  func.func @transform_0(%arg0: i32, %arg1: i32) -> (i32, i32) {
    %c1_i32 = arith.constant 1 : i32
    %0 = arith.muli %arg0, %c1_i32 : i32
    %1 = arith.addi %0, %arg1 : i32
    %c0_i32 = arith.constant 0 : i32
    %2 = arith.minsi %1, %c0_i32 : i32
    %c0_i32_0 = arith.constant 0 : i32
    %c0_i32_1 = arith.constant 0 : i32
    return %2, %c0_i32_0 : i32, i32
  }
  func.func @transform_1(%arg0: i32, %arg1: i32) -> (i32, i32) {
    %c1_i32 = arith.constant 1 : i32
    %0 = arith.muli %arg0, %c1_i32 : i32
    %1 = arith.addi %0, %arg1 : i32
    %c0_i32 = arith.constant 0 : i32
    %2 = arith.minsi %1, %c0_i32 : i32
    %c0_i32_0 = arith.constant 0 : i32
    %c0_i32_1 = arith.constant 0 : i32
    return %2, %c0_i32_0 : i32, i32
  }
  func.func @transform_2(%arg0: i32, %arg1: i32) -> (i32, i32) {
    %c1_i32 = arith.constant 1 : i32
    %0 = arith.muli %arg0, %c1_i32 : i32
    %1 = arith.addi %0, %arg1 : i32
    %c0_i32 = arith.constant 0 : i32
    %2 = arith.minsi %1, %c0_i32 : i32
    %c0_i32_0 = arith.constant 0 : i32
    %c0_i32_1 = arith.constant 0 : i32
    return %2, %c0_i32_0 : i32, i32
  }
  func.func @transform_3(%arg0: i32, %arg1: i32) -> (i32, i32) {
    %c0_i32 = arith.constant 0 : i32
    %c0_i32_0 = arith.constant 0 : i32
    return %arg0, %c0_i32 : i32, i32
  }
  func.func @transform_4(%arg0: i32, %arg1: i32) -> (i32, i32) {
    %c0_i32 = arith.constant 0 : i32
    %c0_i32_0 = arith.constant 0 : i32
    return %arg0, %c0_i32 : i32, i32
  }
  func.func @transform_5(%arg0: i32, %arg1: i32) -> (i32, i32) {
    %c0_i32 = arith.constant 0 : i32
    %c0_i32_0 = arith.constant 0 : i32
    return %arg0, %c0_i32 : i32, i32
  }
}

</mosaic_0001>

<bundles_post_ra>
// kernel: sed_removed_focal_loss.1
= control target key start
LH: loop header
LB: loop body
LE: loop exit
PB: predicated region body
PF: predicated region fallthrough
CT: control target
= control target key end

     0   :  { %11 = vsyncpa [#allocation5], 0  ;;  %v263_v1 = vmov 0.0   ;;  %s343_s0 = inlined_call_operand.vmem [shape: f32[4,128], index: 0, kind: input, shape index: {}]   ;;  %s344_s1 = inlined_call_operand.vmem [shape: f32[4,128], index: 1, kind: input, shape index: {}]   ;;  %s345_s2 = inlined_call_operand.vmem [shape: f32[4,128], index: 2, kind: input, shape index: {}]   ;;  %s346_s3 = inlined_call_operand.hbm [shape: f32[1,1], index: 3, kind: output, shape index: {0}]   ;;  %s347_s4 = inlined_call_operand.hbm [shape: f32[1,1], index: 4, kind: output, shape index: {1}]   ;;  %s348_s5 = inlined_call_operand.hbm [shape: f32[1,1], index: 5, kind: output, shape index: {2}]  }
   0x1   :  { %v106_v0 = vld [vmem:[%s343_s0] sm:$0xf]  ;;  %104 = vst [vmem:[#allocation2] sm:$0xf] %v263_v1  ;;  %105 = vst [vmem:[#allocation3] sm:$0xf] %v263_v1 }
   0x2   :  { %v107_v2 = vmax.f32 %v106_v0, 1e-05 }
   0x3   :  { %12 = vsyncpa [#allocation7], 0  ;;  %v109_v5 = vld [vmem:[%s344_s1] sm:$0xf]  ;;  %v264_v16 = vmov 1.0   ;;  %vm134_vm1 = vcmask 1043456  }
   0x4   :  { %v108_v3 = vmin.f32 %v107_v2, 0.99999  ;;  %v114_v8 = vsub.f32 1.0, %v109_v5  ;;  %v110_v10 = vld [vmem:[%s345_s2] sm:$0xf]  ;;  %s229_s24 = scalar_lea.hbm %s347_s4, 16 }
   0x5   :  { %vm121_vm0 = vcmp.gt.f32.partialorder %v110_v10, 0.0  ;;  %p230_p0 = scmp.ne.s32.totalorder %s347_s4, %s229_s24  ;;  %p233_p1 = scmp.lt.u32.totalorder %s229_s24, %s347_s4 }
   0x6   :  { %225 = vlog2.f32 %v108_v3  ;;  %v115_v4 = vsub.f32 1.0, %v108_v3  ;;  %v122_v17 = vsel %vm121_vm0, 0.1, %v264_v16 }
   0x7   :  { %p235_p2 = pnand %p233_p1, %p230_p0 }
   0x8   :  { %227 = vlog2.f32 %v115_v4  ;;  %v124_v15 = vld [vmem:[#allocation2] sm:$0xf]  ;;  %v127_v19 = vld [vmem:[#allocation3] sm:$0xf] }
  0x10   :  { %v226_v6 = vpop.eup %225 }
  0x11   :  { %v112_v7 = vmul.f32 0.6931472, %v226_v6 }
  0x12   :  { %v228_v9 = vpop.eup %227 }
  0x13   :  { %v113_v11 = vmul.f32 %v112_v7, %v109_v5  ;;  %v117_v12 = vmul.f32 0.6931472, %v228_v9 }
  0x15   :  { %v118_v13 = vmul.f32 %v117_v12, %v114_v8 }
  0x17   :  { %v119_v14 = vadd.f32 %v118_v13, %v113_v11 }
  0x19   :  { %v120_v18 = vsub.f32 0.0, %v119_v14 }
  0x1b   :  { %v125_v20 = vadd.f32 %v124_v15, %v120_v18  ;;  %v123_v21 = vmul.f32 %v122_v17, %v120_v18 }
  0x1d   :  { %126 = vst [vmem:[#allocation2] sm:$0xf] %v125_v20  ;;  %v128_v22 = vadd.f32 %v127_v19, %v123_v21 }
  0x1f   :  { %129 = vst [vmem:[#allocation3] sm:$0xf] %v128_v22 }
  0x24   :  { %v133_v23 = vld [vmem:[#allocation2] sm:$0xf] }
  0x25   :  { %v135_v24 = vsel %vm134_vm1, %v133_v23, 0.0 }
  0x26   :  { %136 = vadd.xlane.f32.xlu0 %v135_v24  ;;  %v149_v25 = vld [vmem:[#allocation3] sm:$0xf] }
  0x27   :  { %v150_v26 = vsel %vm134_vm1, %v149_v25, 0.0 }
  0x2a   :  { %151 = vadd.xlane.f32.xlu0 %v150_v26 }
  0xb3   :  { %v137_v27 = vpop.xlane.xlu0 %136 }
  0xb4   :  { %v138_v28 = vrot.slane %v137_v27, 4 }
  0xb6   :  { %v139_v29 = vadd.f32 %v138_v28, %v137_v27 }
  0xb7   :  { %v152_v30 = vpop.xlane.xlu0 %151 }
  0xb8   :  { %v140_v31 = vrot.slane %v139_v29, 2  ;;  %v153_v32 = vrot.slane %v152_v30, 4 }
  0xba   :  { %v154_v33 = vadd.f32 %v153_v32, %v152_v30  ;;  %v141_v34 = vadd.f32 %v140_v31, %v139_v29 }
  0xbc   :  { %v155_v35 = vrot.slane %v154_v33, 2  ;;  %v142_v36 = vrot.slane %v141_v34, 1 }
  0xbe   :  { %v156_v37 = vadd.f32 %v155_v35, %v154_v33  ;;  %v143_v38 = vadd.f32 %v142_v36, %v141_v34 }
  0xc0   :  { %216 = vpush %v143_v38  ;;  %v157_v39 = vrot.slane %v156_v37, 1 }
  0xc2   :  { %v158_v40 = vadd.f32 %v157_v39, %v156_v37 }
  0xc4   :  { %218 = vpush %v158_v40 }
  0xf1   :  { %s217_s0 = spop %216 }
  0xf2   :  { %148 = sst [smem:[#allocation6]] %s217_s0 }
  0xf3   :  { %238 = shalt.err (!%p235_p2)
}
  0xf4   :  { %s265_s29 = smov [#allocation6]   ;;  %146 = sst [smem:[#allocation4]] %s217_s0 }
  0xf5   :  { %177 = dma.smem_to_hbm %s265_s29, 16, %s347_s4, [#allocation7]  }
  0xf6   :  { %s219_s7 = spop %218  ;;  %s239_s10 = scalar_lea.hbm %s346_s3, 16 }
  0xf7   :  { %161 = sst [smem:[#allocation8]] %s219_s7  ;;  %p240_p3 = scmp.ne.s32.totalorder %s346_s3, %s239_s10 }
  0xf8   :  { %p243_p4 = scmp.lt.u32.totalorder %s239_s10, %s346_s3 }
  0xfa   :  { %p245_p5 = pnand %p243_p4, %p240_p3 }
  0xfc   :  { %248 = shalt.err (!%p245_p5)
}
  0xfd   :  { %s266_s15 = smov [#allocation4]   ;;  %s249_s19 = scalar_lea.hbm %s348_s5, 16 }
  0xfe   :  { %169 = dma.smem_to_hbm %s266_s15, 16, %s346_s3, [#allocation5]  }
  0xff   :  { %p250_p6 = scmp.ne.s32.totalorder %s348_s5, %s249_s19  ;;  %p253_p7 = scmp.lt.u32.totalorder %s249_s19, %s348_s5 }
 0x101   :  { %p255_p8 = pnand %p253_p7, %p250_p6 }
 0x103   :  { %258 = shalt.err (!%p255_p8)
}
 0x104   :  { %s267_s0 = smov [#allocation8]  }
 0x105   :  { %185 = dma.smem_to_hbm %s267_s0, 16, %s348_s5, [#allocation7]  }
 0x106   :  { %259 = dma.done.wait [#allocation5], 16  }
 0x107   :  { %260 = vsyncadd [#allocation5], 4294967280 }
 0x108   :  { %261 = dma.done.wait [#allocation7], 32  }
 0x109   :  { %262 = vsyncadd [#allocation7], 4294967264 }
 0x10a   :  { %195 = sfence }
 0x10b   :  { %196 = vsyncpa [#allocation5], 1 }
 0x10c   :  { %197 = vsyncpa [#allocation7], 1 }

</bundles_post_ra>
